<compile_context>
chip_gen: v7x
topology: tpu7x:2x2x1
jax: 0.10.0
libtpu: 0.0.40
codegen_flags: <defaults>
</compile_context>

<pallas_src>
import jax
import jax.numpy as jnp
from jax import lax
from jax.experimental import pallas as pl
from jax.experimental.pallas import tpu as pltpu


def _round_up(x, m):
    return (x + m - 1) // m * m


def _vmem_budget_bytes():
    """Generation-aware scoped-VMEM budget: half of physical VMEM, capped."""
    phys = 64 * 1024 * 1024  # conservative default = v7x per-TC VMEM
    try:
        info = pltpu.get_tpu_info()
        for name in ("vmem_capacity_bytes", "vmem_size_bytes", "vmem_bytes"):
            v = getattr(info, name, None)
            if v:
                phys = int(v)
                break
    except Exception:
        pass
    # v7x: 64 MiB -> 32 MiB budget; v5e/v6e: 128 MiB -> 64 MiB budget.
    return min(phys // 2, 96 * 1024 * 1024)


def _choose_tile_b(B, in_dim, n_class, elt_bytes, vmem_budget):
    """Pick a batch tile: multiple of 128, multi-MiB, VMEM- and occupancy-aware."""
    target_tile_bytes = 4 * 1024 * 1024  # ~4 MiB x-tile amortizes grid overhead
    tile = max(128, (target_tile_bytes // max(1, in_dim * elt_bytes)) // 128 * 128)

    # Keep >= ~8 grid steps so the "parallel" batch axis gives both v7x cores
    # several steps each and double-buffering can overlap DMA with compute.
    tile = min(tile, max(128, _round_up(pl.cdiv(B, 8), 128)))

    def fits(t):
        streamed = 2 * (t * in_dim + t * n_class) * elt_bytes      # x/out double-buffered
        resident = 2 * (in_dim * n_class + n_class) * elt_bytes    # w + b (x2 headroom)
        return streamed + resident <= int(0.8 * vmem_budget)

    while tile > 128 and not fits(tile):
        tile -= 128
    # TODO(synk): if in_dim ever gets so large that even a 128-row tile misses
    # the VMEM budget, add a K grid axis (and an N axis for huge n_class).
    return tile


def _linear_kernel(x_ref, w_ref, b_ref, o_ref):
    # Small-B path.  x_ref: (B, in_dim), w_ref: (in_dim, n_class),
    # b_ref: (1, n_class), o_ref: (B, n_class).
    acc = jnp.dot(x_ref[...], w_ref[...], preferred_element_type=jnp.float32)
    o_ref[...] = (acc + b_ref[...].astype(jnp.float32)).astype(o_ref.dtype)


def _linear_kernel_t(x_ref, w_ref, b_ref, o_ref):
    # Tiled path, lane-dense transposed output.
    # x_ref: (TILE_B, in_dim), w_ref: (in_dim, n_class), b_ref: (n_class, 1),
    # o_ref: (n_class, TILE_B) — lane dim = TILE_B (multiple of 128).
    # out[c, b] = sum_k w_t[k, c] * x[b, k]
    acc = lax.dot_general(
        w_ref[...],
        x_ref[...],
        dimension_numbers=(((0,), (1,)), ((), ())),
        preferred_element_type=jnp.float32,
    )
    o_ref[...] = (acc + b_ref[...].astype(jnp.float32)).astype(o_ref.dtype)
    # TODO(synk): a softmax/argmax epilogue would ride for free in idle
    # VPU/EUP slots here if the surrounding model ever needs it fused.


def mlp_classifier_forward(x, w_t, b):
    """x: (B, in_dim), w_t: (in_dim, n_class), b: (n_class,). Returns (B, n_class)."""
    B, in_dim = x.shape
    n_class = w_t.shape[1]
    elt = x.dtype.itemsize
    vmem_budget = _vmem_budget_bytes()

    whole_bytes = (B * in_dim + in_dim * n_class + n_class + B * n_class) * elt
    if B <= 1024 and whole_bytes <= min(8 * 1024 * 1024, int(0.8 * vmem_budget)):
        # Overhead-bound regime: no grid, no pipeline bookkeeping.
        return pl.pallas_call(
            _linear_kernel,
            out_shape=jax.ShapeDtypeStruct((B, n_class), x.dtype),
            in_specs=[
                pl.BlockSpec(memory_space=pltpu.MemorySpace.VMEM),
                pl.BlockSpec(memory_space=pltpu.MemorySpace.VMEM),
                pl.BlockSpec(memory_space=pltpu.MemorySpace.VMEM),
            ],
            out_specs=pl.BlockSpec(memory_space=pltpu.MemorySpace.VMEM),
            compiler_params=pltpu.CompilerParams(vmem_limit_bytes=vmem_budget),
        )(x, w_t, b.reshape(1, n_class))

    # Batch-tiled path: stream x tiles, keep weight/bias resident (constant
    # index_map), no padding (Pallas masks the ragged boundary block).
    tile_b = _choose_tile_b(B, in_dim, n_class, elt, vmem_budget)
    num_tiles = pl.cdiv(B, tile_b)

    out_t = pl.pallas_call(
        _linear_kernel_t,
        out_shape=jax.ShapeDtypeStruct((n_class, B), x.dtype),
        grid_spec=pl.GridSpec(
            grid=(num_tiles,),
            in_specs=[
                pl.BlockSpec((tile_b, in_dim), lambda i: (i, 0)),
                pl.BlockSpec((in_dim, n_class), lambda i: (0, 0)),  # resident
                pl.BlockSpec((n_class, 1), lambda i: (0, 0)),       # resident
            ],
            out_specs=pl.BlockSpec((n_class, tile_b), lambda i: (0, i)),
        ),
        compiler_params=pltpu.CompilerParams(
            # "parallel" lets v7x shard batch tiles across its 2 TensorCores.
            dimension_semantics=("parallel",),
            vmem_limit_bytes=vmem_budget,
        ),
    )(x, w_t, b.reshape(n_class, 1))

    # Tiny (n_class, B) transpose back to (B, n_class) — output is <<< input.
    return out_t.T


if __name__ == "__main__":
    in_dim, n_class = 32, 4

    key = jax.random.PRNGKey(0)
    kx, kw, kb, kx2 = jax.random.split(key, 4)

    # Deterministic params (mimics PyTorch Linear's uniform init range).
    bound = 1.0 / (in_dim ** 0.5)
    w = jax.random.uniform(kw, (n_class, in_dim), jnp.float32, -bound, bound)
    b = jax.random.uniform(kb, (n_class,), jnp.float32, -bound, bound)

    # --- small-B path (no grid, everything VMEM-resident) ---
    B = 8
    x = jax.random.normal(kx, (B, in_dim), jnp.float32)
    out = jax.block_until_ready(mlp_classifier_forward(x, w.T, b))
    ref = x @ w.T + b
    assert out.shape == (B, n_class)
    assert jnp.allclose(out, ref, atol=1e-5, rtol=1e-5)

    # --- batch-tiled path: ragged boundary tile, lane-dense transposed store ---
    B_big = 3000  # > small-B threshold, not a multiple of the tile
    x_big = jax.random.normal(kx2, (B_big, in_dim), jnp.float32)
    out_big = jax.block_until_ready(mlp_classifier_forward(x_big, w.T, b))
    ref_big = x_big @ w.T + b
    assert out_big.shape == (B_big, n_class)
    assert jnp.allclose(out_big, ref_big, atol=1e-5, rtol=1e-5)

    # --- bf16 streaming: cast upstream (halves HBM bytes), f32 MXU accumulate ---
    out_bf16 = jax.block_until_ready(
        mlp_classifier_forward(
            x_big.astype(jnp.bfloat16),
            w.T.astype(jnp.bfloat16),
            b.astype(jnp.bfloat16),
        )
    )
    assert out_bf16.shape == (B_big, n_class)
    # bf16 inputs => looser tolerance vs the f32 reference.
    assert jnp.allclose(out_bf16.astype(jnp.float32), ref_big, atol=1e-1, rtol=1e-1)

    print("KERNEL_OK")
</pallas_src>

<mosaic_0001>
module attributes {stable_mosaic.version = 11 : i64} {
  func.func @_linear_kernel(%arg0: memref<8x32xf32, #tpu.memory_space<vmem>>, %arg1: memref<32x4xf32, #tpu.memory_space<vmem>>, %arg2: memref<1x4xf32, #tpu.memory_space<vmem>>, %arg3: memref<8x4xf32, #tpu.memory_space<vmem>>) attributes {dimension_semantics = [], scalar_prefetch = 0 : i64, scratch_operands = 0 : i64, tpu.core_type = #tpu.core_type<tc>} {
    %c0 = arith.constant 0 : index
    %c0_0 = arith.constant 0 : index
    %0 = vector.load %arg0[%c0, %c0_0] : memref<8x32xf32, #tpu.memory_space<vmem>>, vector<8x32xf32>
    %c0_1 = arith.constant 0 : index
    %c0_2 = arith.constant 0 : index
    %1 = vector.load %arg1[%c0_1, %c0_2] : memref<32x4xf32, #tpu.memory_space<vmem>>, vector<32x4xf32>
    %cst = arith.constant dense<0.000000e+00> : vector<8x4xf32>
    %2 = tpu.matmul %0, %1, %cst {dimension_numbers = #tpu.dot_dimension_numbers<[1], [0], [0], [1], [0, 0, 1, 1], [], []>} : vector<8x32xf32>, vector<32x4xf32>, vector<8x4xf32> -> vector<8x4xf32>
    %c0_3 = arith.constant 0 : index
    %c0_4 = arith.constant 0 : index
    %3 = vector.load %arg2[%c0_3, %c0_4] : memref<1x4xf32, #tpu.memory_space<vmem>>, vector<1x4xf32>
    %4 = vector.broadcast %3 : vector<1x4xf32> to vector<8x4xf32>
    %5 = arith.addf %2, %4 : vector<8x4xf32>
    %c0_5 = arith.constant 0 : index
    %c0_6 = arith.constant 0 : index
    %6 = vector.load %arg3[%c0_5, %c0_6] : memref<8x4xf32, #tpu.memory_space<vmem>>, vector<8x4xf32>
    tpu.vector_store %arg3[%c0_5, %c0_6], %5 {strides = array<i32>} : memref<8x4xf32, #tpu.memory_space<vmem>>, vector<8x4xf32>,
    return
  }
}

</mosaic_0001>

<bundles_post_ra>
// kernel: tpu_custom_call.1
= control target key start
LH: loop header
LB: loop body
LE: loop exit
PB: predicated region body
PF: predicated region fallthrough
CT: control target
= control target key end

     0   :  { %v133_v0 = vmov 0.0|0.0   ;;  %vm134_vm0 = vmmov 0   ;;  %v135_v4 = vmov 0.0   ;;  %vm26_vm1 = vcmask 261120   ;;  %s177_s1 = inlined_call_operand.vmem [shape: f32[32,4], index: 1, kind: input, shape index: {}]   ;;  %s178_s0 = inlined_call_operand.vmem [shape: f32[8,32], index: 0, kind: input, shape index: {}]   ;;  %s179_s2 = inlined_call_operand.vmem [shape: f32[1,4], index: 2, kind: input, shape index: {}]   ;;  %s180_s3 = inlined_call_operand.vmem [shape: f32[8,4], index: 3, kind: output, shape index: {}]  }
   0x1   :  { %124 = vmatprep.subr.bf16.mxu0 %v133_v0  ;;  %v15_v1 = vld [vmem:[%s177_s1] sm:$0xff]  ;;  %v16_v2 = vld [vmem:[%s177_s1 + $0x8] sm:$0xff]  ;;  %v17_v3 = vld [vmem:[%s177_s1 + $0x10] sm:$0xff]  ;;  %121 = vmatprep.mubr.msk.f32.mxu0 %vm134_vm0, %v135_v4  ;;  %vm100_vm2 = vcmask 31744  }
   0x2   :  { %v125_v5 = vpack.c.bf16 %v16_v2, %v15_v1  ;;  %v18_v6 = vld [vmem:[%s177_s1 + $0x18] sm:$0xff]  ;;  %v14_v8 = vld [vmem:[%s178_s0] sm:$0xff] }
   0x3   :  { %v128_v7 = vpack.c.bf16 %v18_v6, %v17_v3  ;;  %v106_v9 = vld [vmem:[%s179_s2] ss:$0 sm:$0xff] }
   0x4   :  { %126 = vmatpush3.bf16.msra.mxu0 %v125_v5 }
   0x5   :  { %127 = vmatprep.subr.bf16.mxu0 %v133_v0 }
   0x8   :  { %129 = vmatpush3.bf16.msra.mxu0 %v128_v7 }
   0xb   :  { %122 = vmatmul.mubr.msk.f32.vlgmr.msra.gmra.mrb[0].mxu0 %vm26_vm1, %v14_v8 }
  0xde   :  { %v96_v10 = vpop.f32.mrb[0].mxu0 }
  0xdf   :  { %v97_v11 = vadd.f32 %v106_v9, %v96_v10  ;;  %v123_v12 = vpop.f32.mrb[1].mxu0 }
  0xe1   :  { %101 = vst.msk [vmem:[%s180_s3] sm:$0xff] %vm100_vm2, %v97_v11 }

</bundles_post_ra>
